<compile_context>
chip_gen: v6e
topology: v6e:2x2x1
jax: 0.10.0
libtpu: 0.0.40
codegen_flags: <defaults>
</compile_context>

<pallas_src>
import jax
import jax.numpy as jnp
from jax.experimental import pallas as pl
from jax.experimental.pallas import tpu as pltpu

LANE = 1024                  # lane-dense last dim (multiple of 128)
DEFAULT_TILE_ROWS = 1024     # (1024, 1024) f32 block = 4 MiB per buffer
SMALL_THRESHOLD = 65536      # below this many elements, plain XLA is faster


def _affine_kernel(wb_ref, x_ref, o_ref):
    # wb_ref: (2,) f32 in SMEM -> [weight, bias].
    # x_ref / o_ref: (tile_rows, LANE) VMEM tiles.
    w = wb_ref[0]
    b = wb_ref[1]
    o_ref[...] = (x_ref[...].astype(jnp.float32) * w + b).astype(o_ref.dtype)


def linear_regression_forward(x, weight, bias, *,
                              tile_rows=DEFAULT_TILE_ROWS,
                              small_threshold=SMALL_THRESHOLD):
    """y = x @ weight.T + bias, for weight (1, 1), bias (1,), x (N, 1)."""
    n, f = x.shape
    assert f == 1 and weight.shape == (1, 1) and bias.shape == (1,)

    w = weight.reshape(()).astype(jnp.float32)
    b = bias.reshape(()).astype(jnp.float32)

    # Fast path for tiny batches: Pallas launch overhead dwarfs the work.
    if n * f < small_threshold:
        return (x.astype(jnp.float32) * w + b).astype(x.dtype)

    # ---- lane-dense tiled Pallas path ----
    total = n * f
    flat = x.reshape(total)

    rows = -(-total // LANE)                        # ceil(total / LANE)
    tile_rows = max(8, ((tile_rows + 7) // 8) * 8)  # keep sublane-aligned
    tr = min(tile_rows, max(8, ((rows + 7) // 8) * 8))
    padded_rows = -(-rows // tr) * tr
    padded_total = padded_rows * LANE

    if padded_total != total:
        flat = jnp.pad(flat, (0, padded_total - total))
    x2d = flat.reshape(padded_rows, LANE)           # free bitcast when contiguous

    wb = jnp.stack([w, b])                          # (2,) f32 scalar params -> SMEM

    out2d = pl.pallas_call(
        _affine_kernel,
        out_shape=jax.ShapeDtypeStruct((padded_rows, LANE), x.dtype),
        grid_spec=pl.GridSpec(
            grid=(padded_rows // tr,),
            in_specs=[
                pl.BlockSpec(memory_space=pltpu.MemorySpace.SMEM),   # [w, b]
                pl.BlockSpec((tr, LANE), lambda i: (i, 0)),          # x tile
            ],
            out_specs=pl.BlockSpec((tr, LANE), lambda i: (i, 0)),    # y tile
        ),
        compiler_params=pltpu.CompilerParams(
            dimension_semantics=("parallel",),       # shard rows across TCs (v7x)
            vmem_limit_bytes=32 * 1024 * 1024,       # 2x(in+out) buffers <= 16 MiB
        ),
    )(wb, x2d)

    # Drop the padded tail and restore the (N, 1) module layout.
    return out2d.reshape(padded_total)[:total].reshape(n, f)


if __name__ == "__main__":
    key = jax.random.PRNGKey(0)
    kx_small, kx_pallas, kw, kb = jax.random.split(key, 4)

    # nn.Linear(1, 1) parameters: weight (1, 1), bias (1,).
    weight = jax.random.uniform(kw, (1, 1), jnp.float32, minval=-1.0, maxval=1.0)
    bias = jax.random.uniform(kb, (1,), jnp.float32, minval=-1.0, maxval=1.0)

    # (a) Tiny batch consistent with the module's (batch, 1) input:
    #     takes the plain-XLA fast path.
    x_small = jax.random.normal(kx_small, (8, 1), jnp.float32)
    y_small = jax.block_until_ready(linear_regression_forward(x_small, weight, bias))
    ref_small = x_small * weight[0, 0] + bias[0]
    assert y_small.shape == (8, 1)
    assert jnp.allclose(y_small, ref_small, atol=1e-6), "small-batch mismatch"

    # (b) Small-but-real batch, forced through the lane-dense tiled Pallas path
    #     (small_threshold=0).  N is not a multiple of 1024 and rows is not a
    #     multiple of the tile, so this exercises padding + a multi-step grid
    #     while keeping the test tiny (~160 KiB).
    n_pallas = 40_000
    x_pallas = jax.random.normal(kx_pallas, (n_pallas, 1), jnp.float32)
    y_pallas = jax.block_until_ready(
        linear_regression_forward(x_pallas, weight, bias,
                                  tile_rows=8, small_threshold=0))
    ref_pallas = x_pallas * weight[0, 0] + bias[0]
    assert y_pallas.shape == (n_pallas, 1)
    assert jnp.allclose(y_pallas, ref_pallas, atol=1e-6), "pallas-path mismatch"

    print("KERNEL_OK")
</pallas_src>

<mosaic_0001>
module attributes {stable_mosaic.version = 11 : i64} {
  func.func @_affine_kernel(%arg0: i32, %arg1: memref<2xf32, #tpu.memory_space<smem>>, %arg2: memref<8x1024xf32, #tpu.memory_space<vmem>>, %arg3: memref<8x1024xf32, #tpu.memory_space<vmem>>) attributes {dimension_semantics = [#tpu.dimension_semantics<parallel>], iteration_bounds = array<i64: 5>, scalar_prefetch = 0 : i64, scratch_operands = 0 : i64, tpu.core_type = #tpu.core_type<tc>, window_params = [{transform_indices = @transform_0, window_bounds = array<i64: 2>}, {transform_indices = @transform_1, window_bounds = array<i64: 8, 1024>}, {transform_indices = @transform_2, window_bounds = array<i64: 8, 1024>}]} {
    %c0 = arith.constant 0 : index
    %0 = memref.load %arg1[%c0] : memref<2xf32, #tpu.memory_space<smem>>
    %c1 = arith.constant 1 : index
    %1 = memref.load %arg1[%c1] : memref<2xf32, #tpu.memory_space<smem>>
    %c0_0 = arith.constant 0 : index
    %c0_1 = arith.constant 0 : index
    %2 = vector.load %arg2[%c0_0, %c0_1] : memref<8x1024xf32, #tpu.memory_space<vmem>>, vector<8x1024xf32>
    %3 = vector.broadcast %0 : f32 to vector<8x1024xf32>
    %4 = arith.mulf %2, %3 : vector<8x1024xf32>
    %5 = vector.broadcast %1 : f32 to vector<8x1024xf32>
    %6 = arith.addf %4, %5 : vector<8x1024xf32>
    %c0_2 = arith.constant 0 : index
    %c0_3 = arith.constant 0 : index
    %7 = vector.load %arg3[%c0_2, %c0_3] : memref<8x1024xf32, #tpu.memory_space<vmem>>, vector<8x1024xf32>
    tpu.vector_store %arg3[%c0_2, %c0_3], %6 {strides = array<i32>} : memref<8x1024xf32, #tpu.memory_space<vmem>>, vector<8x1024xf32>,
    return
  }
  func.func @transform_0(%arg0: i32) -> i32 {
    %c0_i32 = arith.constant 0 : i32
    %c0_i32_0 = arith.constant 0 : i32
    return %c0_i32 : i32
  }
  func.func @transform_1(%arg0: i32) -> (i32, i32) {
    %c0_i32 = arith.constant 0 : i32
    %c0_i32_0 = arith.constant 0 : i32
    return %arg0, %c0_i32 : i32, i32
  }
  func.func @transform_2(%arg0: i32) -> (i32, i32) {
    %c0_i32 = arith.constant 0 : i32
    %c0_i32_0 = arith.constant 0 : i32
    return %arg0, %c0_i32 : i32, i32
  }
}

</mosaic_0001>

<bundles_post_ra>
// kernel: tpu_custom_call.1
= control target key start
LH: loop header
LB: loop body
LE: loop exit
PB: predicated region body
PF: predicated region fallthrough
CT: control target
= control target key end

     0   :  { %7 = vsyncpa [#allocation5], 0  ;;  %s664_s0 = inlined_call_operand.hbm [shape: f32[2], index: 0, kind: input, shape index: {}]   ;;  %s665_s1 = inlined_call_operand.hbm [shape: f32[40,1024], index: 1, kind: input, shape index: {}]   ;;  %s666_s2 = inlined_call_operand.hbm [shape: f32[40,1024], index: 2, kind: output, shape index: {}]  }
   0x1   :  { %8 = vsyncpa [#allocation3], 0 }
   0x2   :  { %10 = vsyncpa [#allocation3 + $0x1], 0 }
   0x3   :  { %11 = vsyncpa [#allocation4], 0 }
   0x4   :  { %13 = vsyncpa [#allocation4 + $0x1], 0  ;;  %s508_s9 = smov 0   ;;  %s510_s10 = smov 0  }
   0x5   :  { %s512_s11 = smov 0   ;;  %s514_s12 = smov 0  }
   0x6 LB: > { %s529_s13 = sadd.s32 4294967295, %s488_s12   ;;  %s305_s14 = sadd.s32 4294967294, %s488_s12   ;;  %s488_s12 = sphi %s514_s12, %s685_s12   ;;  %s484_s11 = sphi %s512_s11, %s684_s11   ;;  %s480_s10 = sphi %s510_s10, %s683_s10   ;;  %s476_s9 = sphi %s508_s9, %s682_s9  }
   0x7   : > { %p60_p0 = scmp.ne.s32.totalorder %s480_s10, %s476_s9  ;;  %p667_p1 = scmp.eq.s32.totalorder %s529_s13, 0 }
   0x8   : > { %p84_p2 = scmp.eq.s32.totalorder %s529_s13, 4  ;;  %p90_p3 = scmp.eq.s32.totalorder %s305_s14, 4 }
   0x9   : > { %p538_p4 = por %p667_p1, %p60_p0  ;;  %p306_p5 = scmp.ge.s32.totalorder %s488_s12, 1 }
   0xa   : > { %p543_p6 = por %p90_p3, %p60_p0  ;;  %p97_p7 = scmp.lt.s32.totalorder %s488_s12, 6 }
   0xb   : > { %s671_s15 = scalar_select %p538_p4, 1, 0 }
   0xc   : > { %s672_s16 = scalar_select %p543_p6, 1, 0 }
   0xd   : > { %p548_p8 = pnand %p306_p5, %p97_p7  ;;  %s553_s18 = sadd.s32 1, %s488_s12  }
   0xe   : > { %s44_s19 = ssub.s32 %s488_s12, %s553_s18  ;;  %s47_s20 = sadd.s32 1, %s484_s11 }
   0xf   : > { %s673_s17 = scalar_select %p548_p8, 1, 0 }
  0x10   : > { %p332_p9 = pneg %p548_p8  ;;  %p45_p11 = scmp.eq.s32.totalorder %s44_s19, 0 }
  0x11   : > { %p54_p12 = scmp.ne.s32.totalorder %s484_s11, %s480_s10  ;;  %p55_p13 = scmp.eq.s32.totalorder %s488_s12, 0 }
  0x12   : > { %p333_p10 = pnand %p332_p9, %p667_p1  ;;  %p345_p0 = scmp.lt.s32.totalorder %s488_s12, 5 }
  0x13   : > { %s490_s21 = smov [#allocation2]   ;;  %p56_p3 = por %p55_p13, %p54_p12 }
  0x14   : > { %335 = dma.hbm_to_smem (!%p333_p10), %s664_s0, 16, %s490_s21, [#allocation5]  }
  0x15   : > { %s570_s24 = scalar_select %p45_p11, %s484_s11, %s47_s20  }
  0x16   : > { %p574_p5 = por %p84_p2, %p54_p12  ;;  %s119_s26 = sand.u32 1, %s484_s11  }
  0x17   : > { %s322_s27 = sshll.u32 %s488_s12, 10  ;;  %s309_s28 = sshll.u32 %s119_s26, 6 }
  0x18   : > { %s674_s25 = scalar_select %p574_p5, 1, 0 }
  0x19   : > { %s583_s3 = scalar_lea.hbm %s665_s1, %s322_s27  ;;  %s123_s4 = scalar_lea.vmem [#allocation6], %s309_s28 }
  0x1a   : > { %s131_s5 = sshll.u32 %s123_s4, 4  ;;  %p585_p7 = pnand %p345_p0, %p56_p3  ;;  %s132_s5 = int_to_ptr.vmem [resolvable:$true] %s131_s5 }
  0x1b   : > { %s120_s7 = scalar_lea.sflag [#allocation3], %s119_s26  ;;  %s392_s8 = scalar_lea.hbm %s583_s3, 1024 }
  0x1c   : > { %p393_p2 = scmp.ne.s32.totalorder %s583_s3, %s392_s8  ;;  %p394_p9 = pneg %p585_p7 }
  0x1d   : > { %s397_s20 = scalar_lea.hbm %s665_s1, 5120  ;;  %p398_p12 = scmp.lt.s32.totalorder %s583_s3, %s665_s1 }
  0x1e   : > { %p395_p10 = pnand %p394_p9, %p393_p2  ;;  %p399_p13 = scmp.lt.s32.totalorder %s397_s20, %s392_s8 }
  0x20   : > { %p396_p11 = pneg %p395_p10  ;;  %p400_p0 = por %p399_p13, %p398_p12 }
  0x22   : > { %p401_p3 = pnand %p400_p0, %p396_p11 }
  0x24   : > { %404 = shalt.err (!%p401_p3)
}
  0x25   : > { %s405_s23 = scalar_lea.vmem %s132_s5, 1024  ;;  %s491_s26 = smov [#allocation6]  }
  0x26   : > { %p406_p1 = scmp.ne.s32.totalorder %s132_s5, %s405_s23  ;;  %s410_s27 = sshll.u32 %s491_s26, 4  ;;  %s411_s27 = int_to_ptr.vmem [resolvable:$false] %s410_s27 }
  0x27   : > { %s412_s28 = scalar_lea.vmem %s411_s27, 2048  ;;  %p413_p2 = scmp.lt.s32.totalorder %s132_s5, %s411_s27 }
  0x28   : > { %p408_p6 = pnand %p406_p1, %p394_p9  ;;  %p414_p10 = scmp.lt.s32.totalorder %s412_s28, %s405_s23 }
  0x2a   : > { %p409_p5 = pneg %p408_p6  ;;  %p415_p4 = por %p414_p10, %p413_p2 }
  0x2c   : > { %p416_p8 = pnand %p415_p4, %p409_p5 }
  0x2e   : > { %419 = shalt.err (!%p416_p8)
}
  0x2f   : > { %339 = dma.hbm_to_vmem [thread:$0]  (!%p585_p7), %s583_s3, 1024, %s132_s5, %s120_s7  }
  0x30   : > { %p676_p11 = scmp.ne.s32.totalorder %s673_s17, 0 }
  0x31   : > { %p677_p12 = scmp.eq.s32.totalorder (!%p676_p11), %s529_s13, 0 }
  0x32   : > { %140 = sbr.rel (%p676_p11) target bundleno = 89 (0x59), region = 28 }
  0x37   : > { %463 = dma.done.wait (%p677_p12), [#allocation5], 16   ;;  %p678_p1 = pmov %p677_p12 }
  0x38   : > { %s610_s29 = sand.u32 1, %s480_s10   ;;  %p679_p4 = scmp.ne.s32.totalorder %s671_s15, 0 }
  0x39   : > { %465 = vsyncadd (%p678_p1), [#allocation5], 4294967280  ;;  %s314_s30 = sshll.u32 %s610_s29, 6  ;;  %s147_s4 = scalar_lea.sflag [#allocation3], %s610_s29 }
  0x3a   : > { %s150_s6 = scalar_lea.vmem [#allocation6], %s314_s30 }
  0x3b   : > { %467 = dma.done.wait (%p679_p4), %s147_s4, 1024  }
  0x3c   : > { %469 = vsyncadd (%p679_p4), %s147_s4, 4294966272 }
  0x3d   : > { %155 = sfence }
  0x3e   : > { %s172_s17 = sld [smem:[#allocation2]]  ;;  %v174_v0 = vld [vmem:[%s150_s6] sm:$0xff]  ;;  %v175_v1 = vld [vmem:[%s150_s6 + $0x8] sm:$0xff]  ;;  %v176_v2 = vld [vmem:[%s150_s6 + $0x10] sm:$0xff]  ;;  %s323_s15 = sshll.u32 %s529_s13, 10 }
  0x3f   : > { %s316_s3 = sld [smem:[#allocation2 + $0x1]]  ;;  %v177_v3 = vld [vmem:[%s150_s6 + $0x18] sm:$0xff]  ;;  %v178_v4 = vld [vmem:[%s150_s6 + $0x20] sm:$0xff]  ;;  %v179_v5 = vld [vmem:[%s150_s6 + $0x28] sm:$0xff]  ;;  %s171_s5 = scalar_lea.vmem [#allocation7], %s314_s30 }
  0x40   : > { %v180_v6 = vld [vmem:[%s150_s6 + $0x30] sm:$0xff]  ;;  %v181_v8 = vld [vmem:[%s150_s6 + $0x38] sm:$0xff]  ;;  %s223_s7 = sshll.u32 %s171_s5, 4  ;;  %s622_s13 = scalar_lea.hbm %s666_s2, %s323_s15  ;;  %s624_s7 = int_to_ptr.vmem [resolvable:$true] %s223_s7 }
  0x41   : > { %s209_s19 = scalar_lea.sflag [#allocation4], %s610_s29  ;;  %s420_s20 = scalar_lea.vmem %s624_s7, 1024 }
  0x42   : > { %p421_p6 = scmp.ne.s32.totalorder %s624_s7, %s420_s20  ;;  %p680_p8 = scmp.ne.s32.totalorder %s674_s25, 0 }
  0x43   : > { %s492_s21 = smov [#allocation7]  }
  0x44   : > { %v182_v7 = vstv %s172_s17  ;;  %p422_p5 = pnand %p421_p6, %p680_p8  ;;  %s424_s22 = sshll.u32 %s492_s21, 4  ;;  %s425_s22 = int_to_ptr.vmem [resolvable:$false] %s424_s22 }
  0x45   : > { %v183_v9 = vmul.f32 %v182_v7, %v174_v0  ;;  %v191_v10 = vstv %s316_s3  ;;  %v184_v11 = vmul.f32 %v182_v7, %v175_v1  ;;  %v185_v12 = vmul.f32 %v182_v7, %v176_v2  ;;  %s426_s23 = scalar_lea.vmem %s425_s22, 2048  ;;  %p427_p9 = scmp.lt.s32.totalorder %s624_s7, %s425_s22 }
  0x46   : > { %v186_v13 = vmul.f32 %v182_v7, %v177_v3  ;;  %v187_v14 = vmul.f32 %v182_v7, %v178_v4  ;;  %v188_v15 = vmul.f32 %v182_v7, %v179_v5  ;;  %v189_v16 = vmul.f32 %v182_v7, %v180_v6  ;;  %p423_p7 = pneg %p422_p5  ;;  %p428_p13 = scmp.lt.s32.totalorder %s426_s23, %s420_s20 }
  0x47   : > { %v192_v17 = vadd.f32 %v191_v10, %v183_v9  ;;  %v193_v18 = vadd.f32 %v191_v10, %v184_v11  ;;  %v194_v19 = vadd.f32 %v191_v10, %v185_v12  ;;  %v190_v20 = vmul.f32 %v182_v7, %v181_v8 }
  0x48   : > { %v195_v21 = vadd.f32 %v191_v10, %v186_v13  ;;  %v196_v22 = vadd.f32 %v191_v10, %v187_v14  ;;  %v197_v23 = vadd.f32 %v191_v10, %v188_v15  ;;  %v198_v24 = vadd.f32 %v191_v10, %v189_v16  ;;  %p429_p0 = por %p428_p13, %p427_p9 }
  0x49   : > { %200 = vst [vmem:[%s171_s5] sm:$0xff] %v192_v17  ;;  %201 = vst [vmem:[%s171_s5 + $0x8] sm:$0xff] %v193_v18  ;;  %v199_v25 = vadd.f32 %v191_v10, %v190_v20 }
  0x4a   : > { %202 = vst [vmem:[%s171_s5 + $0x10] sm:$0xff] %v194_v19  ;;  %203 = vst [vmem:[%s171_s5 + $0x18] sm:$0xff] %v195_v21  ;;  %p430_p3 = pnand %p429_p0, %p423_p7 }
  0x4b   : > { %204 = vst [vmem:[%s171_s5 + $0x20] sm:$0xff] %v196_v22  ;;  %205 = vst [vmem:[%s171_s5 + $0x28] sm:$0xff] %v197_v23 }
  0x4c   : > { %206 = vst [vmem:[%s171_s5 + $0x30] sm:$0xff] %v198_v24  ;;  %207 = vst [vmem:[%s171_s5 + $0x38] sm:$0xff] %v199_v25 }
  0x4d   : > { %433 = shalt.err (!%p430_p3)
}
  0x4e   : > { %s434_s26 = scalar_lea.hbm %s622_s13, 1024  ;;  %s438_s29 = scalar_lea.hbm %s666_s2, 5120 }
  0x4f   : > { %p435_p2 = scmp.ne.s32.totalorder %s622_s13, %s434_s26  ;;  %p439_p12 = scmp.lt.s32.totalorder %s622_s13, %s666_s2 }
  0x50   : > { %p440_p1 = scmp.lt.s32.totalorder %s438_s29, %s434_s26 }
  0x51   : > { %p436_p10 = pnand %p435_p2, %p680_p8 }
  0x52   : > { %p441_p4 = por %p440_p1, %p439_p12 }
  0x53   : > { %p437_p11 = pneg %p436_p10 }
  0x55   : > { %p442_p6 = pnand %p441_p4, %p437_p11 }
  0x57   : > { %445 = shalt.err (!%p442_p6)
}
  0x58   : > { %330 = dma.vmem_to_hbm [thread:$0]  (%p680_p8), %s624_s7, 1024, %s622_s13, %s209_s19  }
  0x59 PF: > { %p347_p5 = scmp.ge.s32.totalorder %s488_s12, 2  ;;  %s235_s6 = sand.u32 1, %s476_s9  }
  0x5a   : > { %p681_p7 = scmp.ne.s32.totalorder %s672_s16, 0  ;;  %s236_s17 = scalar_lea.sflag [#allocation4], %s235_s6 }
  0x5c   : > { %p341_p9 = pnand %p347_p5, %p681_p7 }
  0x5e   : > { %p342_p13 = pneg %p341_p9 }
  0x60   : > { %471 = dma.done.wait (%p342_p13), %s236_s17, 1024  }
  0x61   : > { %473 = vsyncadd (%p342_p13), %s236_s17, 4294966272  ;;  %p16_p0 = scmp.ge.s32.totalorder %s553_s18, 7   ;;  %s682_s9 = smov %s480_s10 }
  0x62   : > { %s683_s10 = smov %s484_s11  ;;  %s684_s11 = smov %s570_s24 }
  0x63   : > { %s685_s12 = smov %s553_s18  ;;  %18 = sbr.rel (!%p16_p0) target bundleno = 6 (0x6), region = 78 }
  0x68   :  { %241 = vsyncpa [#allocation3], 1 }
  0x69   :  { %243 = vsyncpa [#allocation3 + $0x1], 1 }
  0x6a   :  { %244 = vsyncpa [#allocation4], 1 }
  0x6b   :  { %246 = vsyncpa [#allocation4 + $0x1], 1 }
  0x6c   :  { %247 = vsyncpa [#allocation5], 1 }
  0x6d   :  { %249 = vsyncpa [#allocation5 + $0x1], 1 }

</bundles_post_ra>
